<compile_context>
chip_gen: v7x
topology: tpu7x:2x2x1
jax: 0.10.0
libtpu: 0.0.40
codegen_flags: <defaults>
</compile_context>

<pallas_src>
import functools

import jax
import jax.numpy as jnp
from jax.experimental import pallas as pl
from jax.experimental.pallas import tpu as pltpu


def _round_up(x: int, m: int) -> int:
    return ((x + m - 1) // m) * m


def mlp_kernel(x_ref, w1_ref, b1_ref, w2_ref, b2_ref, w3_ref, b3_ref, o_ref):
    """One batch tile of the 3-layer MLP, batch on the lane axis.

    x_ref : [I, TB]    w1_ref: [H, I]   b1_ref: [H, 1]
    w2_ref: [H, H]     b2_ref: [H, 1]
    w3_ref: [H, O]     b3_ref: [O, 1]   o_ref : [O, TB]
    """
    x = x_ref[...]
    in_size = x_ref.shape[0]
    out_size = o_ref.shape[0]

    # ---- Layer 1 ----------------------------------------------------------
    if in_size == 1:
        # K=1 contraction: pure VPU broadcast-multiply, skip the MXU entirely.
        h1 = w1_ref[...] * x                                    # [H,1]*[1,TB] -> [H,TB]
    else:
        h1 = jnp.dot(w1_ref[...], x, preferred_element_type=jnp.float32)
    h1 = jnp.tanh(h1 + b1_ref[...])                             # [H, TB]

    # ---- Layer 2 (the only real MXU matmul) --------------------------------
    h2 = jnp.tanh(
        jnp.dot(w2_ref[...], h1, preferred_element_type=jnp.float32)
        + b2_ref[...]
    )                                                           # [H, TB]

    # ---- Layer 3 ----------------------------------------------------------
    if out_size == 1:
        # N(out)=1: VPU multiply + XLU sublane reduce (MXU stays out of it).
        out = jnp.sum(w3_ref[...] * h2, axis=0, keepdims=True)  # [1, TB]
    else:
        # Contract the H axis of w3 ([H, O]) with the H axis of h2 ([H, TB]).
        out = jax.lax.dot_general(
            w3_ref[...], h2, (((0,), (0,)), ((), ())),
            preferred_element_type=jnp.float32)                 # [O, TB]

    o_ref[...] = (out + b3_ref[...]).astype(o_ref.dtype)


@functools.partial(jax.jit, static_argnames=("batch_tile",))
def neural_net_forward(x, w1, b1, w2, b2, w3, b3, *, batch_tile=4096):
    """Forward pass of NeuralNet.

    x : [B, input_size] f32
    Weights/biases in PyTorch layout: w1 [H, I], b1 [H], w2 [H, H], b2 [H],
    w3 [O, H], b3 [O].  Returns [B, O] f32.
    """
    B, I = x.shape
    H = w2.shape[0]
    O = w3.shape[0]

    # Batch tile: lane-dense (multiple of 128), big by default so per-step
    # overhead is amortized; even number of tiles when >1 so v7x's two
    # TensorCores split the "parallel" grid axis evenly.
    Bp = _round_up(B, 128)
    TB = min(_round_up(batch_tile, 128), Bp)
    num_tiles = -(-Bp // TB)
    if num_tiles > 1 and num_tiles % 2:
        num_tiles += 1
    Bp = num_tiles * TB

    # Layout plumbing in the wrapper (done once by XLA, outside the kernel):
    # batch onto lanes, biases as columns, w3 as [H, O].
    xt = jnp.swapaxes(x, 0, 1)                                  # [I, B]
    if Bp != B:
        xt = jnp.pad(xt, ((0, 0), (0, Bp - B)))                 # [I, Bp]
    b1c = b1.reshape(H, 1)
    b2c = b2.reshape(H, 1)
    w3t = jnp.swapaxes(w3, 0, 1)                                # [H, O]
    b3c = b3.reshape(O, 1)

    out_t = pl.pallas_call(
        mlp_kernel,
        out_shape=jax.ShapeDtypeStruct((O, Bp), jnp.float32),
        grid_spec=pltpu.PrefetchScalarGridSpec(
            num_scalar_prefetch=0,
            grid=(num_tiles,),
            in_specs=[
                pl.BlockSpec((I, TB), lambda i: (0, i)),  # x  : lane-dense, batch-tiled
                pl.BlockSpec((H, I), lambda i: (0, 0)),   # w1 : VMEM-resident
                pl.BlockSpec((H, 1), lambda i: (0, 0)),   # b1
                pl.BlockSpec((H, H), lambda i: (0, 0)),   # w2
                pl.BlockSpec((H, 1), lambda i: (0, 0)),   # b2
                pl.BlockSpec((H, O), lambda i: (0, 0)),   # w3 (transposed to [H, O])
                pl.BlockSpec((O, 1), lambda i: (0, 0)),   # b3
            ],
            out_specs=pl.BlockSpec((O, TB), lambda i: (0, i)),  # lane-dense output
        ),
        compiler_params=pltpu.CompilerParams(
            dimension_semantics=("parallel",),   # megacore sharding on v7x
        ),
        cost_estimate=pl.CostEstimate(
            flops=2 * Bp * (I * H + H * H + H * O),
            transcendentals=2 * Bp * H,
            bytes_accessed=4 * (Bp * I + Bp * O + H * I + H * H + H * O + 2 * H + O),
        ),
    )(xt, w1, b1c, w2, b2c, w3t, b3c)

    # Back to [B, O] for the caller (row-major batch-first, like PyTorch).
    return jnp.swapaxes(out_t, 0, 1)[:B]


def init_params(key, input_size, hidden_size, output_size):
    """Deterministic parameter init (uniform, like PyTorch's Linear default).

    PyTorch layout: weights [out_features, in_features], biases [out_features].
    """
    ks = jax.random.split(key, 6)

    def uniform(k, shape, fan_in):
        bound = 1.0 / jnp.sqrt(fan_in)
        return jax.random.uniform(k, shape, jnp.float32, -bound, bound)

    w1 = uniform(ks[0], (hidden_size, input_size), input_size)
    b1 = uniform(ks[1], (hidden_size,), input_size)
    w2 = uniform(ks[2], (hidden_size, hidden_size), hidden_size)
    b2 = uniform(ks[3], (hidden_size,), hidden_size)
    w3 = uniform(ks[4], (output_size, hidden_size), hidden_size)
    b3 = uniform(ks[5], (output_size,), hidden_size)
    return w1, b1, w2, b2, w3, b3


def _reference(x, params):
    w1, b1, w2, b2, w3, b3 = params
    h = jnp.tanh(x @ w1.T + b1)
    h = jnp.tanh(h @ w2.T + b2)
    return h @ w3.T + b3


if __name__ == "__main__":
    key = jax.random.PRNGKey(0)
    k_x1, k_x2, k_p = jax.random.split(key, 3)

    # Module defaults: input_size=1, output_size=1; hidden=32.
    input_size = 1
    hidden_size = 32
    output_size = 1
    params = init_params(k_p, input_size, hidden_size, output_size)

    # Case 1: batch=50 (not a multiple of 128) -> single 128-wide tile, tests
    # lane padding and the single-step fast path.
    x1 = jax.random.normal(k_x1, (50, input_size), jnp.float32)
    out1 = jax.block_until_ready(neural_net_forward(x1, *params))
    ref1 = _reference(x1, params)
    assert out1.shape == (50, output_size)
    assert jnp.allclose(out1, ref1, atol=1e-5), "mismatch vs reference (case 1)"

    # Case 2: batch=300 with a small tile -> multi-step grid (rounded to an even
    # number of tiles for the v7x megacore path); tests pipelining + padding.
    x2 = jax.random.normal(k_x2, (300, input_size), jnp.float32)
    out2 = jax.block_until_ready(neural_net_forward(x2, *params, batch_tile=128))
    ref2 = _reference(x2, params)
    assert out2.shape == (300, output_size)
    assert jnp.allclose(out2, ref2, atol=1e-5), "mismatch vs reference (case 2)"

    print("KERNEL_OK")
</pallas_src>

<mosaic_0001>
module attributes {stable_mosaic.version = 11 : i64} {
  func.func @mlp_kernel(%arg0: i32, %arg1: memref<1x128xf32, #tpu.memory_space<vmem>>, %arg2: memref<32x1xf32, #tpu.memory_space<vmem>>, %arg3: memref<32x1xf32, #tpu.memory_space<vmem>>, %arg4: memref<32x32xf32, #tpu.memory_space<vmem>>, %arg5: memref<32x1xf32, #tpu.memory_space<vmem>>, %arg6: memref<32x1xf32, #tpu.memory_space<vmem>>, %arg7: memref<1x1xf32, #tpu.memory_space<vmem>>, %arg8: memref<1x128xf32, #tpu.memory_space<vmem>>) attributes {dimension_semantics = [#tpu.dimension_semantics<parallel>], iteration_bounds = array<i64: 1>, scalar_prefetch = 0 : i64, scratch_operands = 0 : i64, tpu.core_type = #tpu.core_type<tc>, window_params = [{transform_indices = @transform_0, window_bounds = array<i64: 1, 128>}, {pipeline_mode = #tpu.pipeline_mode<synchronous>, transform_indices = @transform_1, window_bounds = array<i64: 32, 1>}, {pipeline_mode = #tpu.pipeline_mode<synchronous>, transform_indices = @transform_2, window_bounds = array<i64: 32, 1>}, {pipeline_mode = #tpu.pipeline_mode<synchronous>, transform_indices = @transform_3, window_bounds = array<i64: 32, 32>}, {pipeline_mode = #tpu.pipeline_mode<synchronous>, transform_indices = @transform_4, window_bounds = array<i64: 32, 1>}, {pipeline_mode = #tpu.pipeline_mode<synchronous>, transform_indices = @transform_5, window_bounds = array<i64: 32, 1>}, {pipeline_mode = #tpu.pipeline_mode<synchronous>, transform_indices = @transform_6, window_bounds = array<i64: 1, 1>}, {transform_indices = @transform_7, window_bounds = array<i64: 1, 128>}]} {
    %c0 = arith.constant 0 : index
    %c0_0 = arith.constant 0 : index
    %0 = vector.load %arg1[%c0, %c0_0] : memref<1x128xf32, #tpu.memory_space<vmem>>, vector<1x128xf32>
    %c0_1 = arith.constant 0 : index
    %c0_2 = arith.constant 0 : index
    %1 = vector.load %arg2[%c0_1, %c0_2] : memref<32x1xf32, #tpu.memory_space<vmem>>, vector<32x1xf32>
    %2 = vector.broadcast %1 : vector<32x1xf32> to vector<32x128xf32>
    %3 = vector.broadcast %0 : vector<1x128xf32> to vector<32x128xf32>
    %4 = arith.mulf %2, %3 : vector<32x128xf32>
    %c0_3 = arith.constant 0 : index
    %c0_4 = arith.constant 0 : index
    %5 = vector.load %arg3[%c0_3, %c0_4] : memref<32x1xf32, #tpu.memory_space<vmem>>, vector<32x1xf32>
    %6 = vector.broadcast %5 : vector<32x1xf32> to vector<32x128xf32>
    %7 = arith.addf %4, %6 : vector<32x128xf32>
    %8 = math.tanh %7 : vector<32x128xf32>
    %c0_5 = arith.constant 0 : index
    %c0_6 = arith.constant 0 : index
    %9 = vector.load %arg4[%c0_5, %c0_6] : memref<32x32xf32, #tpu.memory_space<vmem>>, vector<32x32xf32>
    %cst = arith.constant dense<0.000000e+00> : vector<32x128xf32>
    %10 = tpu.matmul %9, %8, %cst {dimension_numbers = #tpu.dot_dimension_numbers<[1], [0], [0], [1], [0, 0, 1, 1], [], []>} : vector<32x32xf32>, vector<32x128xf32>, vector<32x128xf32> -> vector<32x128xf32>
    %c0_7 = arith.constant 0 : index
    %c0_8 = arith.constant 0 : index
    %11 = vector.load %arg5[%c0_7, %c0_8] : memref<32x1xf32, #tpu.memory_space<vmem>>, vector<32x1xf32>
    %12 = vector.broadcast %11 : vector<32x1xf32> to vector<32x128xf32>
    %13 = arith.addf %10, %12 : vector<32x128xf32>
    %14 = math.tanh %13 : vector<32x128xf32>
    %c0_9 = arith.constant 0 : index
    %c0_10 = arith.constant 0 : index
    %15 = vector.load %arg6[%c0_9, %c0_10] : memref<32x1xf32, #tpu.memory_space<vmem>>, vector<32x1xf32>
    %16 = vector.broadcast %15 : vector<32x1xf32> to vector<32x128xf32>
    %17 = arith.mulf %16, %14 : vector<32x128xf32>
    %cst_11 = arith.constant dense<0.000000e+00> : vector<128xf32>
    %18 = vector.multi_reduction <add>, %17, %cst_11 [0] : vector<32x128xf32> to vector<128xf32>
    %19 = vector.shape_cast %18 : vector<128xf32> to vector<1x128xf32>
    %c0_12 = arith.constant 0 : index
    %c0_13 = arith.constant 0 : index
    %20 = vector.load %arg7[%c0_12, %c0_13] : memref<1x1xf32, #tpu.memory_space<vmem>>, vector<1x1xf32>
    %21 = vector.broadcast %20 : vector<1x1xf32> to vector<1x128xf32>
    %22 = arith.addf %19, %21 : vector<1x128xf32>
    %c0_14 = arith.constant 0 : index
    %c0_15 = arith.constant 0 : index
    %23 = vector.load %arg8[%c0_14, %c0_15] : memref<1x128xf32, #tpu.memory_space<vmem>>, vector<1x128xf32>
    tpu.vector_store %arg8[%c0_14, %c0_15], %22 {strides = array<i32>} : memref<1x128xf32, #tpu.memory_space<vmem>>, vector<1x128xf32>,
    return
  }
  func.func @transform_0(%arg0: i32) -> (i32, i32) {
    %c0_i32 = arith.constant 0 : i32
    %c0_i32_0 = arith.constant 0 : i32
    return %c0_i32, %arg0 : i32, i32
  }
  func.func @transform_1(%arg0: i32) -> (i32, i32) {
    %c0_i32 = arith.constant 0 : i32
    %c0_i32_0 = arith.constant 0 : i32
    %c0_i32_1 = arith.constant 0 : i32
    return %c0_i32, %c0_i32_0 : i32, i32
  }
  func.func @transform_2(%arg0: i32) -> (i32, i32) {
    %c0_i32 = arith.constant 0 : i32
    %c0_i32_0 = arith.constant 0 : i32
    %c0_i32_1 = arith.constant 0 : i32
    return %c0_i32, %c0_i32_0 : i32, i32
  }
  func.func @transform_3(%arg0: i32) -> (i32, i32) {
    %c0_i32 = arith.constant 0 : i32
    %c0_i32_0 = arith.constant 0 : i32
    %c0_i32_1 = arith.constant 0 : i32
    return %c0_i32, %c0_i32_0 : i32, i32
  }
  func.func @transform_4(%arg0: i32) -> (i32, i32) {
    %c0_i32 = arith.constant 0 : i32
    %c0_i32_0 = arith.constant 0 : i32
    %c0_i32_1 = arith.constant 0 : i32
    return %c0_i32, %c0_i32_0 : i32, i32
  }
  func.func @transform_5(%arg0: i32) -> (i32, i32) {
    %c0_i32 = arith.constant 0 : i32
    %c0_i32_0 = arith.constant 0 : i32
    %c0_i32_1 = arith.constant 0 : i32
    return %c0_i32, %c0_i32_0 : i32, i32
  }
  func.func @transform_6(%arg0: i32) -> (i32, i32) {
    %c0_i32 = arith.constant 0 : i32
    %c0_i32_0 = arith.constant 0 : i32
    %c0_i32_1 = arith.constant 0 : i32
    return %c0_i32, %c0_i32_0 : i32, i32
  }
  func.func @transform_7(%arg0: i32) -> (i32, i32) {
    %c0_i32 = arith.constant 0 : i32
    %c0_i32_0 = arith.constant 0 : i32
    return %c0_i32, %arg0 : i32, i32
  }
}

</mosaic_0001>

<bundles_post_ra>
// kernel: neural_net_forward.1
= control target key start
LH: loop header
LB: loop body
LE: loop exit
PB: predicated region body
PF: predicated region fallthrough
CT: control target
= control target key end

     0   :  { %v336_v0 = vmov 0   ;;  %vm123_vm0 = vcmask 261120   ;;  %s450_s2 = inlined_call_operand.vmem [shape: f32[32,1], index: 2, kind: input, shape index: {}]   ;;  %s451_s1 = inlined_call_operand.vmem [shape: f32[32,1], index: 1, kind: input, shape index: {}]   ;;  %s452_s6 = inlined_call_operand.<no memory space> [shape: f32[1,1], index: 6, kind: input, shape index: {}]   ;;  %s453_s4 = inlined_call_operand.vmem [shape: f32[32,1], index: 4, kind: input, shape index: {}]   ;;  %s454_s5 = inlined_call_operand.vmem [shape: f32[32,1], index: 5, kind: input, shape index: {}]   ;;  %s455_s3 = inlined_call_operand.vmem [shape: f32[32,32], index: 3, kind: input, shape index: {}]   ;;  %s456_s0 = inlined_call_operand.vmem [shape: f32[1,128], index: 0, kind: input, shape index: {}]   ;;  %s457_s7 = inlined_call_operand.vmem [shape: f32[1,128], index: 7, kind: output, shape index: {}]  }
   0x1   :  { %319 = vset.pattern.permute.xlu1 %v336_v0  ;;  %318 = vset.pattern.permute.xlu0 %v336_v0  ;;  %v63_v1 = vld [vmem:[%s450_s2] sm:$0xff]  ;;  %v12_v3 = vstv %s452_s6  ;;  %v64_v4 = vld [vmem:[%s450_s2 + $0x8] sm:$0xff]  ;;  %v32_v6 = vld [vmem:[%s451_s1 + $0x18] sm:$0xff] }
   0x2   :  { %v29_v2 = vld [vmem:[%s451_s1] sm:$0xff]  ;;  %69 = vperm.xlu1 %319, %v63_v1   ;;  %13 = vst [vmem:[#allocation2] sm:$0x1] %v12_v3  ;;  %v30_v5 = vld [vmem:[%s451_s1 + $0x8] sm:$0xff]  ;;  %v31_v7 = vld [vmem:[%s451_s1 + $0x10] sm:$0xff] }
   0x3   :  { %35 = vperm.xlu0 %318, %v29_v2   ;;  %v66_v8 = vld [vmem:[%s450_s2 + $0x18] sm:$0xff]  ;;  %v65_v9 = vld [vmem:[%s450_s2 + $0x10] sm:$0xff]  ;;  %v100_v10 = vld [vmem:[%s453_s4 + $0x8] sm:$0xff] }
   0x4   :  { %v99_v11 = vld [vmem:[%s453_s4] sm:$0xff]  ;;  %v102_v12 = vld [vmem:[%s453_s4 + $0x18] sm:$0xff]  ;;  %v101_v13 = vld [vmem:[%s453_s4 + $0x10] sm:$0xff] }
   0x5   :  { %v226_v14 = vld [vmem:[%s454_s5 + $0x8] sm:$0xff]  ;;  %v225_v15 = vld [vmem:[%s454_s5] sm:$0xff]  ;;  %v228_v16 = vld [vmem:[%s454_s5 + $0x18] sm:$0xff] }
   0x6   :  { %74 = vperm.xlu1 %319, %v64_v4   ;;  %v227_v17 = vld [vmem:[%s454_s5 + $0x10] sm:$0xff]  ;;  %v95_v19 = vld [vmem:[%s455_s3] sm:$0xff]  ;;  %v96_v44 = vld [vmem:[%s455_s3 + $0x8] sm:$0xff] }
   0x7   :  { %40 = vperm.xlu0 %318, %v30_v5   ;;  %v97_v20 = vld [vmem:[%s455_s3 + $0x10] sm:$0xff]  ;;  %299 = vmatprep.mubr.msk.f32.mxu0 %vm123_vm0, %v95_v19  ;;  %v278_v21 = vld [vmem:[%s456_s0] ss:$0 sm:$0xff]  ;;  %v98_v45 = vld [vmem:[%s455_s3 + $0x18] sm:$0xff] }
   0x8   :  { %302 = vmatprep.mubr.msk.f32.mxu1 %vm123_vm0, %v97_v20 }
   0x9   :  { %v262_v18 = vld [vmem:[#allocation2] sm:$0x1] }
   0xa   :  { %50 = vperm.xlu1 %319, %v32_v6  }
   0xb   :  { %45 = vperm.xlu0 %318, %v31_v7  }
   0xe   :  { %84 = vperm.xlu1 %319, %v66_v8   ;;  %v268_v8 = vlaneseq }
   0xf   :  { %79 = vperm.xlu0 %318, %v65_v9  }
  0x12   :  { %110 = vperm.xlu1 %319, %v100_v10  }
  0x13   :  { %105 = vperm.xlu0 %318, %v99_v11   ;;  %v269_v11 = vshrl.u32 %v268_v8, 7 }
  0x16   :  { %120 = vperm.xlu1 %319, %v102_v12  }
  0x17   :  { %115 = vperm.xlu0 %318, %v101_v13  }
  0x1a   :  { %236 = vperm.xlu1 %319, %v226_v14   ;;  %v270_v14 = vsub.s32 0, %v269_v11 }
  0x1b   :  { %231 = vperm.xlu0 %318, %v225_v15  }
  0x1e   :  { %246 = vperm.xlu1 %319, %v228_v16  }
  0x1f   :  { %241 = vperm.xlu0 %318, %v227_v17  }
  0x23   :  { %265 = vperm.xlu0 %318, %v262_v18  }
  0x81   :  { %v70_v22 = vpop.permute.xlu1 %69 }
  0x82   :  { %v36_v23 = vpop.permute.xlu0 %35 }
  0x83   :  { %v59_v24 = vmul.f32 %v278_v21, %v36_v23 }
  0x85   :  { %v87_v25 = vadd.f32 %v70_v22, %v59_v24  ;;  %v75_v26 = vpop.permute.xlu1 %74 }
  0x86   :  { %v41_v27 = vpop.permute.xlu0 %40 }
  0x87   :  { %v60_v28 = vmul.f32 %v278_v21, %v41_v27  ;;  %320 = vtanh.f32 %v87_v25 }
  0x89   :  { %v88_v29 = vadd.f32 %v75_v26, %v60_v28  ;;  %v51_v30 = vpop.permute.xlu1 %50 }
  0x8a   :  { %v46_v31 = vpop.permute.xlu0 %45  ;;  %v62_v32 = vmul.f32 %v278_v21, %v51_v30 }
  0x8b   :  { %322 = vtanh.f32 %v88_v29  ;;  %v61_v33 = vmul.f32 %v278_v21, %v46_v31 }
  0x8d   :  { %v85_v34 = vpop.permute.xlu1 %84 }
  0x8e   :  { %v80_v35 = vpop.permute.xlu0 %79  ;;  %v90_v36 = vadd.f32 %v85_v34, %v62_v32 }
  0x8f   :  { %v89_v37 = vadd.f32 %v80_v35, %v61_v33 }
  0x90   :  { %324 = vtanh.f32 %v90_v36 }
  0x91   :  { %326 = vtanh.f32 %v89_v37  ;;  %v321_v38 = vpop.eup %320  ;;  %v111_v47 = vpop.permute.xlu1 %110 }
  0x92   :  { %v106_v46 = vpop.permute.xlu0 %105 }
  0x95   :  { %v323_v39 = vpop.eup %322  ;;  %v121_v54 = vpop.permute.xlu1 %120 }
  0x96   :  { %v305_v40 = vpack.c.bf16 %v323_v39, %v321_v38  ;;  %v116_v48 = vpop.permute.xlu0 %115 }
  0x98   :  { %306 = vmatprep.subr.bf16.mxu0 %v305_v40  ;;  %313 = vmatprep.subr.bf16.mxu1 %v305_v40 }
  0x99   :  { %308 = vmatpush3.bf16.msra.mxu0 %v305_v40  ;;  %315 = vmatpush3.bf16.msra.mxu1 %v305_v40  ;;  %v237_v60 = vpop.permute.xlu1 %236 }
  0x9a   :  { %v325_v41 = vpop.eup %324  ;;  %v232_v58 = vpop.permute.xlu0 %231 }
  0x9b   :  { %v327_v42 = vpop.eup %326 }
  0x9c   :  { %v309_v43 = vpack.c.bf16 %v325_v41, %v327_v42 }
  0x9d   :  { %v247_v5 = vpop.permute.xlu1 %246 }
  0x9e   :  { %310 = vmatprep.subr.bf16.mxu0 %v309_v43  ;;  %314 = vmatprep.subr.bf16.mxu1 %v309_v43  ;;  %v242_v2 = vpop.permute.xlu0 %241 }
  0x9f   :  { %312 = vmatpush3.bf16.msra.mxu0 %v309_v43  ;;  %316 = vmatpush3.bf16.msra.mxu1 %v309_v43 }
  0xa2   :  { %300 = vmatmul.mubr.msk.f32.vlgmr.msra.gmra.mrb[0].mxu0 %vm123_vm0, %v96_v44  ;;  %303 = vmatmul.mubr.msk.f32.vlgmr.msra.gmra.mrb[0].mxu1 %vm123_vm0, %v98_v45  ;;  %v266_v16 = vpop.permute.xlu0 %265 }
  0xa3   :  { %v271_v18 = vrot.slane %v266_v16, %v270_v14 }
 0x175   :  { %v301_v49 = vpop.f32.mrb[0].mxu0  ;;  %v304_v50 = vpop.f32.mrb[0].mxu1 }
 0x176   :  { %v208_v51 = vadd.f32 %v301_v49, %v111_v47  ;;  %v202_v52 = vpop.f32.mrb[1].mxu0  ;;  %v212_v53 = vpop.f32.mrb[1].mxu1  ;;  %v218_v57 = vadd.f32 %v304_v50, %v121_v54 }
 0x177   :  { %v203_v55 = vadd.f32 %v202_v52, %v106_v46  ;;  %v213_v56 = vadd.f32 %v212_v53, %v116_v48 }
 0x178   :  { %328 = vtanh.f32 %v208_v51 }
 0x179   :  { %330 = vtanh.f32 %v203_v55 }
 0x17a   :  { %332 = vtanh.f32 %v213_v56 }
 0x17b   :  { %334 = vtanh.f32 %v218_v57 }
 0x182   :  { %v329_v59 = vpop.eup %328 }
 0x183   :  { %v250_v61 = vmul.f32 %v329_v59, %v237_v60  ;;  %v331_v62 = vpop.eup %330 }
 0x184   :  { %v333_v63 = vpop.eup %332  ;;  %v249_v0 = vmul.f32 %v331_v62, %v232_v58 }
 0x185   :  { %v335_v1 = vpop.eup %334  ;;  %v251_v4 = vmul.f32 %v333_v63, %v242_v2 }
 0x186   :  { %v253_v3 = vadd.f32 %v250_v61, %v249_v0  ;;  %v252_v6 = vmul.f32 %v335_v1, %v247_v5 }
 0x188   :  { %v254_v7 = vadd.f32 %v253_v3, %v251_v4 }
 0x18a   :  { %v255_v9 = vadd.f32 %v254_v7, %v252_v6 }
 0x18c   :  { %v256_v10 = vrot.slane %v255_v9, 4 }
 0x18e   :  { %v257_v12 = vadd.f32 %v256_v10, %v255_v9 }
 0x190   :  { %v258_v13 = vrot.slane %v257_v12, 2 }
 0x192   :  { %v259_v15 = vadd.f32 %v258_v13, %v257_v12 }
 0x194   :  { %v260_v17 = vrot.slane %v259_v15, 1 }
 0x196   :  { %v261_v19 = vadd.f32 %v260_v17, %v259_v15 }
 0x198   :  { %v272_v20 = vadd.f32 %v271_v18, %v261_v19 }
 0x19a   :  { %273 = vst [vmem:[%s457_s7] sm:$0x1] %v272_v20 }

</bundles_post_ra>
